<compile_context>
chip_gen: v7x
topology: tpu7x:2x2x1
jax: 0.10.0
libtpu: 0.0.40
codegen_flags: <defaults>
</compile_context>

<pallas_src>
import functools

import jax
import jax.numpy as jnp
from jax.experimental import pallas as pl
from jax.experimental.pallas import tpu as pltpu


def _round_up(a: int, m: int) -> int:
    return ((a + m - 1) // m) * m


def _round_down(a: int, m: int) -> int:
    return (a // m) * m


def _sublane_packing(dtype) -> int:
    # Rows per packed vreg tile: 8 (f32), 16 (bf16), 32 (int8/fp8).
    return max(8, 32 // jnp.dtype(dtype).itemsize)


def _hardware_config():
    """Generation-dependent tile / VMEM budgets (conservative fallback)."""
    kind = ""
    try:
        kind = jax.devices()[0].device_kind.lower()
    except Exception:  # pragma: no cover - defensive
        pass
    if "v7" in kind:
        # 64 MiB VMEM per TC: keep blocks modest, buffer deeper instead.
        return {"target_tile_bytes": 2 << 20, "vmem_limit_bytes": 48 << 20,
                "in_buffering": 3}
    if "v6" in kind:
        # 128 MiB physical VMEM vs 32 MiB default scoped limit: bigger blocks.
        return {"target_tile_bytes": 6 << 20, "vmem_limit_bytes": 64 << 20,
                "in_buffering": None}
    if "v5" in kind:
        # 128 MiB physical VMEM; raise the 16 MiB default scoped limit.
        return {"target_tile_bytes": 4 << 20, "vmem_limit_bytes": 64 << 20,
                "in_buffering": None}
    # Unknown generation: stay under the 16 MiB default scoped VMEM limit.
    return {"target_tile_bytes": 2 << 20, "vmem_limit_bytes": None,
            "in_buffering": None}


def _x_block_spec(block_shape, index_map, buffering):
    """BlockSpec with optional deeper pipelining (v7x); guarded fallback."""
    if buffering and buffering > 2 and hasattr(pl, "Buffered"):
        try:
            return pl.BlockSpec(block_shape, index_map,
                                pipeline_mode=pl.Buffered(buffering))
        except TypeError:  # installed API without pipeline_mode support
            pass
    return pl.BlockSpec(block_shape, index_map)


# ----------------------------- kernels --------------------------------------


def _gap_fused_kernel(x_ref, o_ref):
    # x_ref / o_ref: (row_block, H*W); each row is one (n, c) channel.
    x = x_ref[...]
    inv = 1.0 / x_ref.shape[-1]
    # f32 accumulation for the mean; broadcast multiply stays in the native
    # dtype (matches PyTorch, where the avgpool output has the input dtype).
    mean = jnp.sum(x, axis=-1, keepdims=True, dtype=jnp.float32) * inv
    o_ref[...] = (x * mean.astype(x.dtype)).astype(o_ref.dtype)


def _gap_reduce_kernel(x_ref, scale_ref, *, hw, hw_block):
    # Split-path pass 1: accumulate per-row f32 sums over hw tiles.
    k = pl.program_id(1)

    @pl.when(k == 0)
    def _():
        scale_ref[...] = jnp.zeros_like(scale_ref)

    x = x_ref[...]
    if hw % hw_block:  # static check: only emit masking if the hw edge is ragged
        col = jax.lax.broadcasted_iota(jnp.int32, x.shape, dimension=1)
        x = jnp.where(k * hw_block + col < hw, x, 0)
    scale_ref[...] += jnp.sum(x, axis=-1, keepdims=True, dtype=jnp.float32)

    @pl.when(k == pl.num_programs(1) - 1)
    def _():
        scale_ref[...] = scale_ref[...] * (1.0 / hw)


def _gap_scale_kernel(x_ref, s_ref, o_ref):
    # Split-path pass 2: broadcast multiply with the precomputed f32 scale.
    x = x_ref[...]
    o_ref[...] = (x * s_ref[...].astype(x.dtype)).astype(o_ref.dtype)


# --------------------------- block sizing -----------------------------------


def _choose_row_block(rows, hw, dtype, target_bytes):
    pack = _sublane_packing(dtype)
    itemsize = jnp.dtype(dtype).itemsize
    # VMEM footprint of one block row is lane-padded to 128, not raw bytes.
    padded_row_bytes = _round_up(hw, 128) * itemsize
    rb = max(pack, _round_down(target_bytes // padded_row_bytes, pack))
    # Cap the block so sizable tensors get enough grid steps to (a) keep the
    # DMA pipeline full and (b) shard across v7x's two TensorCores.
    total_bytes = _round_up(rows, pack) * padded_row_bytes
    if total_bytes >= 8 * target_bytes:
        min_steps = 8
    elif total_bytes >= 2 * target_bytes:
        min_steps = 4
    else:
        min_steps = 1
    if min_steps > 1:
        rb = min(rb, max(pack, _round_down(rows // min_steps, pack)))
    return int(min(rb, rows))


# ----------------------------- wrapper ---------------------------------------


def global_average_pooling(x: jax.Array, *, max_single_block_bytes=None) -> jax.Array:
    """x: (N, C, H, W) -> scale * x, scale = per-(n, c) spatial mean (SE squeeze)."""
    N, C, H, W = x.shape
    rows, hw = N * C, H * W
    dtype = x.dtype
    itemsize = jnp.dtype(dtype).itemsize
    pack = _sublane_packing(dtype)
    padded_hw = _round_up(hw, 128)

    cfg = _hardware_config()
    target = cfg["target_tile_bytes"]
    vmem_limit = cfg["vmem_limit_bytes"]
    buffering = cfg["in_buffering"]

    if max_single_block_bytes is None:
        # Largest lane-padded block the fused kernel may use (it gets double
        # buffered for both input and output, plus headroom).
        max_single_block_bytes = max(target, (vmem_limit or (16 << 20)) // 8)

    # (N, C, H, W) -> (N*C, H*W) is a contiguity-preserving reshape: free in XLA.
    x2d = x.reshape(rows, hw)
    min_fused_block_bytes = pack * padded_hw * itemsize

    if min_fused_block_bytes <= max_single_block_bytes:
        # ---- Fused single pass: each block spans the full H*W extent. ----
        row_block = _choose_row_block(rows, hw, dtype, target)
        grid = (pl.cdiv(rows, row_block),)  # partial last block is masked, not dropped
        out2d = pl.pallas_call(
            _gap_fused_kernel,
            out_shape=jax.ShapeDtypeStruct((rows, hw), dtype),
            grid_spec=pltpu.PrefetchScalarGridSpec(
                num_scalar_prefetch=0,
                grid=grid,
                in_specs=[_x_block_spec((row_block, hw), lambda i: (i, 0), buffering)],
                out_specs=pl.BlockSpec((row_block, hw), lambda i: (i, 0)),
            ),
            compiler_params=pltpu.CompilerParams(
                dimension_semantics=("parallel",),   # rows independent -> megacore
                vmem_limit_bytes=vmem_limit,
            ),
        )(x2d)
        return out2d.reshape(N, C, H, W)

    # ---- Split path for very large H*W: tiled reduce + tiled multiply. ----
    # TODO(synk): a single emit_pipeline kernel could fuse both sweeps and save
    #             one read of x; two pallas_calls keep it simple and portable.
    row_block = pack
    hw_budget = min(target, max_single_block_bytes)
    hw_block = max(128, _round_down(hw_budget // (row_block * itemsize), 128))
    hw_block = int(min(hw_block, padded_hw))
    row_grid = pl.cdiv(rows, row_block)
    hw_grid = pl.cdiv(hw, hw_block)

    reduce_kernel = functools.partial(_gap_reduce_kernel, hw=hw, hw_block=hw_block)
    scale = pl.pallas_call(
        reduce_kernel,
        out_shape=jax.ShapeDtypeStruct((rows, 1), jnp.float32),
        grid_spec=pltpu.PrefetchScalarGridSpec(
            num_scalar_prefetch=0,
            grid=(row_grid, hw_grid),
            in_specs=[_x_block_spec((row_block, hw_block), lambda i, k: (i, k), buffering)],
            out_specs=pl.BlockSpec((row_block, 1), lambda i, k: (i, 0)),
        ),
        compiler_params=pltpu.CompilerParams(
            dimension_semantics=("parallel", "arbitrary"),
            vmem_limit_bytes=vmem_limit,
        ),
    )(x2d)

    out2d = pl.pallas_call(
        _gap_scale_kernel,
        out_shape=jax.ShapeDtypeStruct((rows, hw), dtype),
        grid_spec=pltpu.PrefetchScalarGridSpec(
            num_scalar_prefetch=0,
            grid=(row_grid, hw_grid),
            in_specs=[
                _x_block_spec((row_block, hw_block), lambda i, k: (i, k), buffering),
                pl.BlockSpec((row_block, 1), lambda i, k: (i, 0)),
            ],
            out_specs=pl.BlockSpec((row_block, hw_block), lambda i, k: (i, k)),
        ),
        compiler_params=pltpu.CompilerParams(
            dimension_semantics=("parallel", "parallel"),
            vmem_limit_bytes=vmem_limit,
        ),
    )(x2d, scale)
    return out2d.reshape(N, C, H, W)


if __name__ == "__main__":
    def reference(x):
        scale = jnp.mean(x.astype(jnp.float32), axis=(2, 3), keepdims=True)
        return x * scale.astype(x.dtype)

    k0, k1, k2, k3, k4 = jax.random.split(jax.random.PRNGKey(0), 5)

    # Primary (spec) shape: N=2, C=4, H=W=16.
    x = jax.random.normal(k0, (2, 4, 16, 16), dtype=jnp.float32)
    out = jax.block_until_ready(global_average_pooling(x))
    assert out.shape == x.shape and out.dtype == x.dtype
    assert jnp.allclose(out, reference(x), atol=1e-5, rtol=1e-5)

    # Larger tensor: multi-step grid with a ragged last row block on every
    # generation (exercises pl.cdiv + Pallas edge masking + min-steps cap).
    x2 = jax.random.normal(k1, (4, 500, 64, 64), dtype=jnp.float32)
    out2 = jax.block_until_ready(global_average_pooling(x2))
    assert jnp.allclose(out2, reference(x2), atol=1e-5, rtol=1e-5)

    # Non-128-aligned H*W (7x7 = 49 lanes): rows path, no wrapper transposes.
    x3 = jax.random.normal(k2, (2, 128, 7, 7), dtype=jnp.float32)
    out3 = jax.block_until_ready(global_average_pooling(x3))
    assert jnp.allclose(out3, reference(x3), atol=1e-5, rtol=1e-5)

    # bf16: f32 accumulation for the mean, native-dtype broadcast multiply.
    x4 = jax.random.normal(k3, (2, 4, 16, 16), dtype=jnp.bfloat16)
    out4 = jax.block_until_ready(global_average_pooling(x4))
    assert out4.dtype == jnp.bfloat16
    assert jnp.allclose(out4.astype(jnp.float32), reference(x4).astype(jnp.float32),
                        atol=1e-2, rtol=1e-2)

    # Force the large-H*W split path (tiled reduce + multiply) on a small
    # tensor, with ragged hw and row edges, by shrinking the block budget.
    x5 = jax.random.normal(k4, (2, 16, 33, 35), dtype=jnp.float32)
    out5 = jax.block_until_ready(
        global_average_pooling(x5, max_single_block_bytes=16 * 1024))
    assert jnp.allclose(out5, reference(x5), atol=1e-5, rtol=1e-5)

    print("KERNEL_OK")
</pallas_src>

<mosaic_0001>
module attributes {stable_mosaic.version = 11 : i64} {
  func.func @_gap_fused_kernel(%arg0: i32, %arg1: memref<8x256xf32, #tpu.memory_space<vmem>>, %arg2: memref<8x256xf32, #tpu.memory_space<vmem>>) attributes {dimension_semantics = [#tpu.dimension_semantics<parallel>], iteration_bounds = array<i64: 1>, scalar_prefetch = 0 : i64, scratch_operands = 0 : i64, tpu.core_type = #tpu.core_type<tc>, window_params = [{transform_indices = @transform_0, window_bounds = array<i64: 8, 256>}, {transform_indices = @transform_1, window_bounds = array<i64: 8, 256>}]} {
    %c0 = arith.constant 0 : index
    %c0_0 = arith.constant 0 : index
    %0 = vector.load %arg1[%c0, %c0_0] : memref<8x256xf32, #tpu.memory_space<vmem>>, vector<8x256xf32>
    %cst = arith.constant dense<0.000000e+00> : vector<8xf32>
    %1 = vector.multi_reduction <add>, %0, %cst [1] : vector<8x256xf32> to vector<8xf32>
    %2 = vector.shape_cast %1 : vector<8xf32> to vector<8x1xf32>
    %cst_1 = arith.constant 3.906250e-03 : f32
    %3 = vector.broadcast %cst_1 : f32 to vector<8x1xf32>
    %4 = arith.mulf %2, %3 : vector<8x1xf32>
    %5 = vector.broadcast %4 : vector<8x1xf32> to vector<8x256xf32>
    %6 = arith.mulf %0, %5 : vector<8x256xf32>
    %c0_2 = arith.constant 0 : index
    %c0_3 = arith.constant 0 : index
    %7 = vector.load %arg2[%c0_2, %c0_3] : memref<8x256xf32, #tpu.memory_space<vmem>>, vector<8x256xf32>
    tpu.vector_store %arg2[%c0_2, %c0_3], %6 {strides = array<i32>} : memref<8x256xf32, #tpu.memory_space<vmem>>, vector<8x256xf32>,
    return
  }
  func.func @transform_0(%arg0: i32) -> (i32, i32) {
    %c0_i32 = arith.constant 0 : i32
    %c0_i32_0 = arith.constant 0 : i32
    return %arg0, %c0_i32 : i32, i32
  }
  func.func @transform_1(%arg0: i32) -> (i32, i32) {
    %c0_i32 = arith.constant 0 : i32
    %c0_i32_0 = arith.constant 0 : i32
    return %arg0, %c0_i32 : i32, i32
  }
}

</mosaic_0001>

<bundles_post_ra>
// kernel: tpu_custom_call.1
= control target key start
LH: loop header
LB: loop body
LE: loop exit
PB: predicated region body
PF: predicated region fallthrough
CT: control target
= control target key end

     0   :  { %6 = vsyncpa [#allocation3], 0  ;;  %s132_s0 = inlined_call_operand.hbm [shape: f32[8,256], index: 0, kind: input, shape index: {}]   ;;  %s133_s1 = inlined_call_operand.hbm [shape: f32[8,256], index: 1, kind: output, shape index: {}]  }
   0x1   :  { %7 = vsyncpa [#allocation4], 0  ;;  %s96_s6 = smov [#allocation2]   ;;  %s48_s10 = scalar_lea.hbm %s132_s0, 256 }
   0x2   :  { %s14_s7 = sshll.u32 %s96_s6, 4  ;;  %p49_p0 = scmp.ne.s32.totalorder %s132_s0, %s48_s10  ;;  %s15_s7 = int_to_ptr.vmem [resolvable:$true] %s14_s7 }
   0x3   :  { %p52_p1 = scmp.lt.u32.totalorder %s48_s10, %s132_s0 }
   0x5   :  { %p54_p2 = pnand %p52_p1, %p49_p0 }
   0x7   :  { %57 = shalt.err (!%p54_p2)
}
   0x8   :  { %s58_s15 = scalar_lea.vmem %s15_s7, 256  ;;  %p63_p4 = scmp.lt.s32.totalorder %s15_s7, %s15_s7 }
   0x9   :  { %p59_p3 = scmp.ne.s32.totalorder %s15_s7, %s58_s15  ;;  %p64_p5 = scmp.lt.s32.totalorder %s58_s15, %s58_s15 }
   0xb   :  { %p65_p6 = por %p64_p5, %p63_p4 }
   0xd   :  { %p66_p7 = pnand %p65_p6, %p59_p3 }
   0xf   :  { %69 = shalt.err (!%p66_p7)
}
  0x10   :  { %17 = dma.hbm_to_vmem [thread:$0]  %s132_s0, 256, %s15_s7, [#allocation3]  }
  0x11   :  { %92 = dma.done.wait [#allocation3], 256  }
  0x12   :  { %93 = vsyncadd [#allocation3], 4294967040  ;;  %v21_v0 = vld [vmem:[#allocation2] sm:$0xff]  ;;  %v22_v1 = vld [vmem:[#allocation2 + $0x8] sm:$0xff]  ;;  %s97_s18 = smov [#allocation5]  }
  0x13   :  { %v23_v2 = vadd.f32 %v22_v1, %v21_v0  ;;  %s37_s19 = sshll.u32 %s97_s18, 4  ;;  %s38_s19 = int_to_ptr.vmem [resolvable:$true] %s37_s19 }
  0x14   :  { %s70_s20 = scalar_lea.vmem %s38_s19, 256  ;;  %p75_p9 = scmp.lt.s32.totalorder %s38_s19, %s38_s19 }
  0x15   :  { %24 = vadd.xlane.f32.xlu0 %v23_v2  ;;  %p71_p8 = scmp.ne.s32.totalorder %s38_s19, %s70_s20  ;;  %p76_p10 = scmp.lt.s32.totalorder %s70_s20, %s70_s20 }
  0x17   :  { %p77_p11 = por %p76_p10, %p75_p9 }
  0x19   :  { %p78_p12 = pnand %p77_p11, %p71_p8 }
  0xa2   :  { %v25_v3 = vpop.xlane.xlu0 %24 }
  0xa3   :  { %v26_v4 = vmul.f32 0.00390625, %v25_v3 }
  0xa5   :  { %v27_v5 = vmul.f32 %v26_v4, %v21_v0  ;;  %v28_v6 = vmul.f32 %v26_v4, %v22_v1 }
  0xa7   :  { %29 = vst [vmem:[#allocation5] sm:$0xff] %v27_v5  ;;  %30 = vst [vmem:[#allocation5 + $0x8] sm:$0xff] %v28_v6 }
  0xa8   :  { %81 = shalt.err (!%p78_p12)
}
  0xa9   :  { %s82_s22 = scalar_lea.hbm %s133_s1, 256 }
  0xaa   :  { %p83_p13 = scmp.ne.s32.totalorder %s133_s1, %s82_s22  ;;  %p86_p0 = scmp.lt.u32.totalorder %s82_s22, %s133_s1 }
  0xac   :  { %p88_p1 = pnand %p86_p0, %p83_p13 }
  0xae   :  { %91 = shalt.err (!%p88_p1)
}
  0xaf   :  { %40 = dma.vmem_to_hbm [thread:$0]  %s38_s19, 256, %s133_s1, [#allocation4]  }
  0xb0   :  { %94 = dma.done.wait [#allocation4], 256  }
  0xb1   :  { %95 = vsyncadd [#allocation4], 4294967040 }
  0xb2   :  { %44 = vsyncpa [#allocation3], 1 }
  0xb3   :  { %45 = vsyncpa [#allocation4], 1 }

</bundles_post_ra>
